<compile_context>
chip_gen: v7x
topology: tpu7x:2x2x1
jax: 0.10.0
libtpu: 0.0.40
codegen_flags: <defaults>
</compile_context>

<pallas_src>
import jax
import jax.numpy as jnp
from jax.experimental import pallas as pl
from jax.experimental.pallas import tpu as pltpu

BN_EPS = 1e-5
H1 = 120      # fc1 output features (PyTorch module)
H2 = 60       # fc2 / fc_action output features
N2_PAD = 128  # fc2 output padded to a full lane width


def _round_up(n, m):
    return ((n + m - 1) // m) * m


def _critic_kernel(x_ref, xa_ref,
                   w1_ref, b1_ref,
                   w2_ref, b2_ref,
                   w3_ref, b3_ref,
                   out_ref):
    # ---- fc1 (BatchNorm folded into w1/b1 by the wrapper) + ReLU ----
    h1 = jnp.dot(x_ref[...], w1_ref[...], preferred_element_type=jnp.float32)
    h1 = jnp.maximum(h1 + b1_ref[...], 0.0)
    # (dropout dp1 == identity in eval mode)

    # ---- fused fc2(x) + fc_action(x_action) + ReLU ----
    # xa_ref holds the action values at lanes [H1, H1+A) and zeros elsewhere;
    # h1's padded lanes are exactly zero, so one add builds the concatenated
    # LHS and a single matmul against the stacked [W2; WA] replaces two
    # serialized MXU passes.
    lhs = h1 + xa_ref[...]
    h2 = jnp.dot(lhs, w2_ref[...], preferred_element_type=jnp.float32)
    h2 = jnp.maximum(h2 + b2_ref[...], 0.0)
    # (dropout dp2 == identity in eval mode)

    # ---- fc3 (single output column) as VPU mul + lane reduction ----
    out_ref[...] = (jnp.sum(h2 * w3_ref[...], axis=-1, keepdims=True)
                    + b3_ref[...])


def prepare_params(params):
    """Fold BN into fc1, fuse fc2/fc_action, and pad everything to 128 lanes."""
    f32 = jnp.float32
    S = params["w1"].shape[0]
    A = params["wa"].shape[0]
    K2 = _round_up(H1 + A, 128)   # fused contraction width (128 for small A)

    # Fold eval-mode BatchNorm affine into fc1.
    scale = params["bn_gamma"] * jax.lax.rsqrt(params["bn_var"] + BN_EPS)  # (1,S)
    shift = params["bn_beta"] - params["bn_mean"] * scale                  # (1,S)
    w1_f = params["w1"] * scale.reshape(S, 1)                              # (S,H1)
    b1_f = params["b1"] + shift @ params["w1"]                             # (1,H1)

    w1p = jnp.zeros((S, K2), f32).at[:, :H1].set(w1_f)
    b1p = jnp.zeros((1, K2), f32).at[:, :H1].set(b1_f)

    # Stack fc2 and fc_action weights along the contraction dim, pad to 128 out.
    w2cat = (jnp.zeros((K2, N2_PAD), f32)
             .at[:H1, :H2].set(params["w2"])
             .at[H1:H1 + A, :H2].set(params["wa"]))
    b2cat = jnp.zeros((1, N2_PAD), f32).at[:, :H2].set(params["b2"] + params["ba"])

    # fc3 weight as a lane-dense row for the VPU reduce.
    w3row = jnp.zeros((1, N2_PAD), f32).at[:, :H2].set(params["w3"].reshape(1, H2))
    b3 = params["b3"].reshape(1, 1).astype(f32)

    return {"w1p": w1p, "b1p": b1p, "w2cat": w2cat, "b2cat": b2cat,
            "w3row": w3row, "b3": b3, "S": S, "A": A, "K2": K2}


def critic_forward(x, x_action, prepped):
    """x: (B, S) float32, x_action: (B, A) float32 -> (B, 1) float32."""
    B, S = x.shape
    A = x_action.shape[1]
    K2 = prepped["K2"]

    # Batch tiling: single step for small B, 512-row blocks for large B.
    TB = 512 if B > 512 else _round_up(B, 8)
    B_pad = _round_up(B, TB)

    x_p = x.astype(jnp.float32)
    if B_pad != B:
        x_p = jnp.zeros((B_pad, S), jnp.float32).at[:B].set(x_p)
    # Action values pre-placed at lanes [H1, H1+A) of the fused-LHS buffer.
    xa_pad = jnp.zeros((B_pad, K2), jnp.float32).at[:B, H1:H1 + A].set(
        x_action.astype(jnp.float32))

    grid = (B_pad // TB,)

    def batch_map(i):
        return (i, 0)

    def rep_map(i):
        return (0, 0)

    out = pl.pallas_call(
        _critic_kernel,
        out_shape=jax.ShapeDtypeStruct((B_pad, 1), jnp.float32),
        grid=grid,
        in_specs=[
            pl.BlockSpec((TB, S), batch_map),
            pl.BlockSpec((TB, K2), batch_map),
            pl.BlockSpec((S, K2), rep_map),
            pl.BlockSpec((1, K2), rep_map),
            pl.BlockSpec((K2, N2_PAD), rep_map),
            pl.BlockSpec((1, N2_PAD), rep_map),
            pl.BlockSpec((1, N2_PAD), rep_map),
            pl.BlockSpec((1, 1), rep_map),
        ],
        out_specs=pl.BlockSpec((TB, 1), batch_map),
        compiler_params=pltpu.CompilerParams(
            dimension_semantics=("parallel",)),
    )(x_p, xa_pad,
      prepped["w1p"], prepped["b1p"],
      prepped["w2cat"], prepped["b2cat"],
      prepped["w3row"], prepped["b3"])

    return out[:B]


def init_params(key, dim_state_in, dim_action_in):
    """Deterministic synthetic parameters matching the PyTorch module's shapes.
    Linear weights are stored transposed: (in_features, out_features)."""
    ks = jax.random.split(key, 8)
    f32 = jnp.float32

    def lin(k, n_in, n_out):
        kw, kb = jax.random.split(k)
        bound = 1.0 / jnp.sqrt(n_in)
        w = jax.random.uniform(kw, (n_in, n_out), f32, -bound, bound)
        b = jax.random.uniform(kb, (1, n_out), f32, -bound, bound)
        return w, b

    w1, b1 = lin(ks[0], dim_state_in, H1)
    w2, b2 = lin(ks[1], H1, H2)
    wa, ba = lin(ks[2], dim_action_in, H2)
    w3, b3 = lin(ks[3], H2, 1)

    # Non-trivial BN running stats so the folding path is actually exercised.
    return {
        "bn_gamma": 1.0 + 0.1 * jax.random.normal(ks[4], (1, dim_state_in), f32),
        "bn_beta": 0.1 * jax.random.normal(ks[5], (1, dim_state_in), f32),
        "bn_mean": 0.2 * jax.random.normal(ks[6], (1, dim_state_in), f32),
        "bn_var": 1.0 + 0.3 * jax.random.uniform(ks[7], (1, dim_state_in), f32),
        "w1": w1, "b1": b1,
        "w2": w2, "b2": b2,
        "wa": wa, "ba": ba,
        "w3": w3, "b3": b3,
    }


def _reference(x, xa, p):
    xn = (x - p["bn_mean"]) / jnp.sqrt(p["bn_var"] + BN_EPS) * p["bn_gamma"] + p["bn_beta"]
    h1 = jnp.maximum(xn @ p["w1"] + p["b1"], 0.0)
    h2 = jnp.maximum(h1 @ p["w2"] + p["b2"] + xa @ p["wa"] + p["ba"], 0.0)
    return h2 @ p["w3"] + p["b3"]


if __name__ == "__main__":
    key = jax.random.PRNGKey(0)
    k_x, k_a, k_p = jax.random.split(key, 3)

    batch = 8
    dim_state_in = 4
    dim_action_in = 2

    x = jax.random.normal(k_x, (batch, dim_state_in), jnp.float32)
    x_action = jax.random.normal(k_a, (batch, dim_action_in), jnp.float32)
    params = init_params(k_p, dim_state_in, dim_action_in)
    prepped = prepare_params(params)

    out = critic_forward(x, x_action, prepped)
    out = jax.block_until_ready(out)

    ref = _reference(x, x_action, params)
    assert out.shape == (batch, 1)
    assert jnp.allclose(out, ref, atol=1e-4, rtol=1e-4), (
        f"max abs err {jnp.max(jnp.abs(out - ref))}")

    print("KERNEL_OK")
</pallas_src>

<mosaic_0001>
module attributes {stable_mosaic.version = 11 : i64} {
  func.func @_critic_kernel(%arg0: i32, %arg1: memref<8x4xf32, #tpu.memory_space<vmem>>, %arg2: memref<8x128xf32, #tpu.memory_space<vmem>>, %arg3: memref<4x128xf32, #tpu.memory_space<vmem>>, %arg4: memref<1x128xf32, #tpu.memory_space<vmem>>, %arg5: memref<128x128xf32, #tpu.memory_space<vmem>>, %arg6: memref<1x128xf32, #tpu.memory_space<vmem>>, %arg7: memref<1x128xf32, #tpu.memory_space<vmem>>, %arg8: memref<1x1xf32, #tpu.memory_space<vmem>>, %arg9: memref<8x1xf32, #tpu.memory_space<vmem>>) attributes {dimension_semantics = [#tpu.dimension_semantics<parallel>], iteration_bounds = array<i64: 1>, scalar_prefetch = 0 : i64, scratch_operands = 0 : i64, tpu.core_type = #tpu.core_type<tc>, window_params = [{transform_indices = @transform_0, window_bounds = array<i64: 8, 4>}, {transform_indices = @transform_1, window_bounds = array<i64: 8, 128>}, {pipeline_mode = #tpu.pipeline_mode<synchronous>, transform_indices = @transform_2, window_bounds = array<i64: 4, 128>}, {pipeline_mode = #tpu.pipeline_mode<synchronous>, transform_indices = @transform_3, window_bounds = array<i64: 1, 128>}, {pipeline_mode = #tpu.pipeline_mode<synchronous>, transform_indices = @transform_4, window_bounds = array<i64: 128, 128>}, {pipeline_mode = #tpu.pipeline_mode<synchronous>, transform_indices = @transform_5, window_bounds = array<i64: 1, 128>}, {pipeline_mode = #tpu.pipeline_mode<synchronous>, transform_indices = @transform_6, window_bounds = array<i64: 1, 128>}, {pipeline_mode = #tpu.pipeline_mode<synchronous>, transform_indices = @transform_7, window_bounds = array<i64: 1, 1>}, {transform_indices = @transform_8, window_bounds = array<i64: 8, 1>}]} {
    %c0 = arith.constant 0 : index
    %c0_0 = arith.constant 0 : index
    %0 = vector.load %arg1[%c0, %c0_0] : memref<8x4xf32, #tpu.memory_space<vmem>>, vector<8x4xf32>
    %c0_1 = arith.constant 0 : index
    %c0_2 = arith.constant 0 : index
    %1 = vector.load %arg3[%c0_1, %c0_2] : memref<4x128xf32, #tpu.memory_space<vmem>>, vector<4x128xf32>
    %cst = arith.constant dense<0.000000e+00> : vector<8x128xf32>
    %2 = tpu.matmul %0, %1, %cst {dimension_numbers = #tpu.dot_dimension_numbers<[1], [0], [0], [1], [0, 0, 1, 1], [], []>} : vector<8x4xf32>, vector<4x128xf32>, vector<8x128xf32> -> vector<8x128xf32>
    %c0_3 = arith.constant 0 : index
    %c0_4 = arith.constant 0 : index
    %3 = vector.load %arg4[%c0_3, %c0_4] : memref<1x128xf32, #tpu.memory_space<vmem>>, vector<1x128xf32>
    %4 = vector.broadcast %3 : vector<1x128xf32> to vector<8x128xf32>
    %5 = arith.addf %2, %4 : vector<8x128xf32>
    %cst_5 = arith.constant 0.000000e+00 : f32
    %6 = vector.broadcast %cst_5 : f32 to vector<8x128xf32>
    %7 = arith.maximumf %5, %6 : vector<8x128xf32>
    %c0_6 = arith.constant 0 : index
    %c0_7 = arith.constant 0 : index
    %8 = vector.load %arg2[%c0_6, %c0_7] : memref<8x128xf32, #tpu.memory_space<vmem>>, vector<8x128xf32>
    %9 = arith.addf %7, %8 : vector<8x128xf32>
    %c0_8 = arith.constant 0 : index
    %c0_9 = arith.constant 0 : index
    %10 = vector.load %arg5[%c0_8, %c0_9] : memref<128x128xf32, #tpu.memory_space<vmem>>, vector<128x128xf32>
    %cst_10 = arith.constant dense<0.000000e+00> : vector<8x128xf32>
    %11 = tpu.matmul %9, %10, %cst_10 {dimension_numbers = #tpu.dot_dimension_numbers<[1], [0], [0], [1], [0, 0, 1, 1], [], []>} : vector<8x128xf32>, vector<128x128xf32>, vector<8x128xf32> -> vector<8x128xf32>
    %c0_11 = arith.constant 0 : index
    %c0_12 = arith.constant 0 : index
    %12 = vector.load %arg6[%c0_11, %c0_12] : memref<1x128xf32, #tpu.memory_space<vmem>>, vector<1x128xf32>
    %13 = vector.broadcast %12 : vector<1x128xf32> to vector<8x128xf32>
    %14 = arith.addf %11, %13 : vector<8x128xf32>
    %cst_13 = arith.constant 0.000000e+00 : f32
    %15 = vector.broadcast %cst_13 : f32 to vector<8x128xf32>
    %16 = arith.maximumf %14, %15 : vector<8x128xf32>
    %c0_14 = arith.constant 0 : index
    %c0_15 = arith.constant 0 : index
    %17 = vector.load %arg7[%c0_14, %c0_15] : memref<1x128xf32, #tpu.memory_space<vmem>>, vector<1x128xf32>
    %18 = vector.broadcast %17 : vector<1x128xf32> to vector<8x128xf32>
    %19 = arith.mulf %16, %18 : vector<8x128xf32>
    %cst_16 = arith.constant dense<0.000000e+00> : vector<8xf32>
    %20 = vector.multi_reduction <add>, %19, %cst_16 [1] : vector<8x128xf32> to vector<8xf32>
    %21 = vector.shape_cast %20 : vector<8xf32> to vector<8x1xf32>
    %c0_17 = arith.constant 0 : index
    %c0_18 = arith.constant 0 : index
    %22 = vector.load %arg8[%c0_17, %c0_18] : memref<1x1xf32, #tpu.memory_space<vmem>>, vector<1x1xf32>
    %23 = vector.broadcast %22 : vector<1x1xf32> to vector<8x1xf32>
    %24 = arith.addf %21, %23 : vector<8x1xf32>
    %c0_19 = arith.constant 0 : index
    %c0_20 = arith.constant 0 : index
    %25 = vector.load %arg9[%c0_19, %c0_20] : memref<8x1xf32, #tpu.memory_space<vmem>>, vector<8x1xf32>
    tpu.vector_store %arg9[%c0_19, %c0_20], %24 {strides = array<i32>} : memref<8x1xf32, #tpu.memory_space<vmem>>, vector<8x1xf32>,
    return
  }
  func.func @transform_0(%arg0: i32) -> (i32, i32) {
    %c0_i32 = arith.constant 0 : i32
    %c0_i32_0 = arith.constant 0 : i32
    return %arg0, %c0_i32 : i32, i32
  }
  func.func @transform_1(%arg0: i32) -> (i32, i32) {
    %c0_i32 = arith.constant 0 : i32
    %c0_i32_0 = arith.constant 0 : i32
    return %arg0, %c0_i32 : i32, i32
  }
  func.func @transform_2(%arg0: i32) -> (i32, i32) {
    %c0_i32 = arith.constant 0 : i32
    %c0_i32_0 = arith.constant 0 : i32
    %c0_i32_1 = arith.constant 0 : i32
    return %c0_i32, %c0_i32_0 : i32, i32
  }
  func.func @transform_3(%arg0: i32) -> (i32, i32) {
    %c0_i32 = arith.constant 0 : i32
    %c0_i32_0 = arith.constant 0 : i32
    %c0_i32_1 = arith.constant 0 : i32
    return %c0_i32, %c0_i32_0 : i32, i32
  }
  func.func @transform_4(%arg0: i32) -> (i32, i32) {
    %c0_i32 = arith.constant 0 : i32
    %c0_i32_0 = arith.constant 0 : i32
    %c0_i32_1 = arith.constant 0 : i32
    return %c0_i32, %c0_i32_0 : i32, i32
  }
  func.func @transform_5(%arg0: i32) -> (i32, i32) {
    %c0_i32 = arith.constant 0 : i32
    %c0_i32_0 = arith.constant 0 : i32
    %c0_i32_1 = arith.constant 0 : i32
    return %c0_i32, %c0_i32_0 : i32, i32
  }
  func.func @transform_6(%arg0: i32) -> (i32, i32) {
    %c0_i32 = arith.constant 0 : i32
    %c0_i32_0 = arith.constant 0 : i32
    %c0_i32_1 = arith.constant 0 : i32
    return %c0_i32, %c0_i32_0 : i32, i32
  }
  func.func @transform_7(%arg0: i32) -> (i32, i32) {
    %c0_i32 = arith.constant 0 : i32
    %c0_i32_0 = arith.constant 0 : i32
    %c0_i32_1 = arith.constant 0 : i32
    return %c0_i32, %c0_i32_0 : i32, i32
  }
  func.func @transform_8(%arg0: i32) -> (i32, i32) {
    %c0_i32 = arith.constant 0 : i32
    %c0_i32_0 = arith.constant 0 : i32
    return %arg0, %c0_i32 : i32, i32
  }
}

</mosaic_0001>

<bundles_post_ra>
// kernel: tpu_custom_call.1
= control target key start
LH: loop header
LB: loop body
LE: loop exit
PB: predicated region body
PF: predicated region fallthrough
CT: control target
= control target key end

     0   :  { %s460_s0 = inlined_call_operand.vmem [shape: f32[8,4], index: 0, kind: input, shape index: {}]   ;;  %s461_s1 = inlined_call_operand.vmem [shape: f32[8,128], index: 1, kind: input, shape index: {}]   ;;  %s462_s2 = inlined_call_operand.vmem [shape: f32[4,128], index: 2, kind: input, shape index: {}]   ;;  %s463_s3 = inlined_call_operand.vmem [shape: f32[1,128], index: 3, kind: input, shape index: {}]   ;;  %s464_s4 = inlined_call_operand.hbm [shape: f32[128,128], index: 4, kind: input, shape index: {}]   ;;  %s465_s5 = inlined_call_operand.vmem [shape: f32[1,128], index: 5, kind: input, shape index: {}]   ;;  %s466_s6 = inlined_call_operand.vmem [shape: f32[1,128], index: 6, kind: input, shape index: {}]   ;;  %s467_s7 = inlined_call_operand.<no memory space> [shape: f32[1,1], index: 7, kind: input, shape index: {}]   ;;  %s468_s8 = inlined_call_operand.vmem [shape: f32[8,1], index: 8, kind: output, shape index: {}]  }
   0x1   :  { %v13_v0 = vstv %s467_s7 }
   0x2   :  { %14 = vst [vmem:[#allocation2] sm:$0x1] %v13_v0 }
   0x3   :  { %15 = vsyncpa [#allocation4], 0  ;;  %s373_s29 = smov [#allocation3]   ;;  %s349_s11 = scalar_lea.hbm %s464_s4, 2048 }
   0x4   :  { %s29_s30 = sshll.u32 %s373_s29, 4  ;;  %p350_p0 = scmp.ne.s32.totalorder %s464_s4, %s349_s11  ;;  %s30_s30 = int_to_ptr.vmem [resolvable:$true] %s29_s30 }
   0x5   :  { %p353_p1 = scmp.lt.u32.totalorder %s349_s11, %s464_s4 }
   0x7   :  { %p355_p2 = pnand %p353_p1, %p350_p0 }
   0x9   :  { %358 = shalt.err (!%p355_p2)
}
   0xa   :  { %s359_s7 = scalar_lea.vmem %s30_s30, 2048  ;;  %p364_p4 = scmp.lt.s32.totalorder %s30_s30, %s30_s30 }
   0xb   :  { %p360_p3 = scmp.ne.s32.totalorder %s30_s30, %s359_s7  ;;  %p365_p5 = scmp.lt.s32.totalorder %s359_s7, %s359_s7 }
   0xd   :  { %p366_p6 = por %p365_p5, %p364_p4 }
   0xf   :  { %p367_p7 = pnand %p366_p6, %p360_p3 }
  0x11   :  { %370 = shalt.err (!%p367_p7)
}
  0x12   :  { %s374_s16 = smov 128   ;;  %s375_s17 = smov 8  }
  0x13   :  { %35 = dma.hbm_to_vmem [thread:$0]  %s464_s4, 2048, %s30_s30, [#allocation4], %s374_s16, %s374_s16, %s375_s17  }
  0x14   :  { %371 = dma.done.wait [#allocation4], 2048  }
  0x15   :  { %372 = vsyncadd [#allocation4], 4294965248  ;;  %v376_v1 = vmov 0.0   ;;  %vm377_vm0 = vmmov 0   ;;  %v378_v2 = vmov 0.0|0.0   ;;  %vm58_vm1 = vcmask 1043456  }
  0x16   :  { %279 = vmatprep.subr.mxu0 %v376_v1  ;;  %281 = vmatprep.mubr.msk.f32.mxu0 %vm377_vm0, %v376_v1  ;;  %vm54_vm2 = vcmask 31744   ;;  %v46_v3 = vld [vmem:[%s462_s2] sm:$0xf]  ;;  %v136_v6 = vld [vmem:[#allocation3 + $0x8] sm:$0xff]  ;;  %v137_v7 = vld [vmem:[#allocation3 + $0x10] sm:$0xff]  ;;  %vm247_vm3 = vcmask 7168  }
  0x17   :  { %319 = vmatprep.subr.bf16.mxu1 %v378_v2  ;;  %316 = vmatprep.mubr.msk.f32.mxu1 %vm377_vm0, %v376_v1  ;;  %v45_v4 = vld [vmem:[%s460_s0] sm:$0xff]  ;;  %v140_v12 = vld [vmem:[#allocation3 + $0x28] sm:$0xff]  ;;  %v141_v14 = vld [vmem:[#allocation3 + $0x30] sm:$0xff] }
  0x18   :  { %v135_v5 = vld [vmem:[#allocation3] sm:$0xff]  ;;  %280 = vmatpush3.msk.msra.mxu0 %vm58_vm1, %v46_v3  ;;  %v138_v8 = vld [vmem:[#allocation3 + $0x18] sm:$0xff]  ;;  %v144_v18 = vld [vmem:[#allocation3 + $0x48] sm:$0xff] }
  0x19   :  { %282 = vmatmul.mubr.msk.f32.vlgmr.msra.gmra.mrb[0].mxu0 %vm54_vm2, %v45_v4  ;;  %v320_v9 = vpack.c.bf16 %v136_v6, %v135_v5  ;;  %v323_v10 = vpack.c.bf16 %v138_v8, %v137_v7  ;;  %v139_v11 = vld [vmem:[#allocation3 + $0x20] sm:$0xff]  ;;  %v142_v15 = vld [vmem:[#allocation3 + $0x38] sm:$0xff]  ;;  %v145_v20 = vld [vmem:[#allocation3 + $0x50] sm:$0xff] }
  0x1a   :  { %v326_v13 = vpack.c.bf16 %v140_v12, %v139_v11  ;;  %v329_v16 = vpack.c.bf16 %v142_v15, %v141_v14  ;;  %v143_v17 = vld [vmem:[#allocation3 + $0x40] sm:$0xff]  ;;  %v146_v21 = vld [vmem:[#allocation3 + $0x58] sm:$0xff]  ;;  %v148_v24 = vld [vmem:[#allocation3 + $0x68] sm:$0xff] }
  0x1b   :  { %321 = vmatpush3.bf16.msra.mxu1 %v320_v9  ;;  %v332_v19 = vpack.c.bf16 %v144_v18, %v143_v17  ;;  %v335_v22 = vpack.c.bf16 %v146_v21, %v145_v20  ;;  %v147_v23 = vld [vmem:[#allocation3 + $0x60] sm:$0xff]  ;;  %v149_v26 = vld [vmem:[#allocation3 + $0x70] sm:$0xff]  ;;  %v150_v27 = vld [vmem:[#allocation3 + $0x78] sm:$0xff] }
  0x1c   :  { %322 = vmatprep.subr.bf16.mxu1 %v378_v2  ;;  %v338_v25 = vpack.c.bf16 %v148_v24, %v147_v23  ;;  %v341_v28 = vpack.c.bf16 %v150_v27, %v149_v26  ;;  %v254_v29 = vld [vmem:[%s463_s3] ss:$0 sm:$0xff] }
  0x1d   :  { %v133_v33 = vld [vmem:[%s461_s1] sm:$0xff] }
  0x1e   :  { %v257_v36 = vld [vmem:[%s465_s5] ss:$0 sm:$0xff] }
  0x1f   :  { %324 = vmatpush3.bf16.msra.mxu1 %v323_v10  ;;  %v258_v40 = vld [vmem:[%s466_s6] ss:$0 sm:$0xff] }
  0x20   :  { %325 = vmatprep.subr.bf16.mxu1 %v378_v2  ;;  %v259_v43 = vld [vmem:[#allocation2] ss:$0 sm:$0xff] }
  0x23   :  { %327 = vmatpush3.bf16.msra.mxu1 %v326_v13 }
  0x24   :  { %328 = vmatprep.subr.bf16.mxu1 %v378_v2 }
  0x27   :  { %330 = vmatpush3.bf16.msra.mxu1 %v329_v16 }
  0x28   :  { %331 = vmatprep.subr.bf16.mxu1 %v378_v2 }
  0x2b   :  { %333 = vmatpush3.bf16.msra.mxu1 %v332_v19 }
  0x2c   :  { %334 = vmatprep.subr.bf16.mxu1 %v378_v2 }
  0x2f   :  { %336 = vmatpush3.bf16.msra.mxu1 %v335_v22 }
  0x30   :  { %337 = vmatprep.subr.bf16.mxu1 %v378_v2 }
  0x33   :  { %339 = vmatpush3.bf16.msra.mxu1 %v338_v25 }
  0x34   :  { %340 = vmatprep.subr.bf16.mxu1 %v378_v2 }
  0x37   :  { %342 = vmatpush3.bf16.msra.mxu1 %v341_v28 }
  0xec   :  { %v128_v30 = vpop.f32.mrb[0].mxu0 }
  0xed   :  { %v129_v31 = vadd.f32 %v254_v29, %v128_v30  ;;  %v283_v32 = vpop.f32.mrb[1].mxu0 }
  0xef   :  { %v132_v34 = vmax.f32 %v129_v31, 0.0 }
  0xf1   :  { %v134_v35 = vadd.f32 %v133_v33, %v132_v34 }
  0xf3   :  { %317 = vmatmul.mubr.f32.vlgmr.msra.gmra.mrb[0].mxu1 %v134_v35 }
 0x1c6   :  { %v224_v37 = vpop.f32.mrb[0].mxu1 }
 0x1c7   :  { %v225_v38 = vadd.f32 %v257_v36, %v224_v37  ;;  %v318_v39 = vpop.f32.mrb[1].mxu1 }
 0x1c9   :  { %v228_v41 = vmax.f32 %v225_v38, 0.0 }
 0x1cb   :  { %v236_v42 = vmul.f32 %v258_v40, %v228_v41 }
 0x1cd   :  { %237 = vadd.xlane.f32.xlu0 %v236_v42 }
 0x25a   :  { %v238_v44 = vpop.xlane.xlu0 %237 }
 0x25b   :  { %v246_v45 = vadd.f32 %v259_v43, %v238_v44 }
 0x25d   :  { %248 = vst.msk [vmem:[%s468_s8] sm:$0xff] %vm247_vm3, %v246_v45 }
 0x25e   :  { %253 = vsyncpa [#allocation4], 1 }

</bundles_post_ra>
